<compile_context>
chip_gen: v6e
topology: v6e:2x2x1
jax: 0.10.0
libtpu: 0.0.40
codegen_flags: <defaults>
</compile_context>

<pallas_src>
import functools

import numpy as np

import jax
import jax.numpy as jnp
from jax.experimental import pallas as pl
from jax.experimental.pallas import tpu as pltpu


def _round_up(x, m):
    return -(-x // m) * m


# --------------------------------------------------------------------------
# Pallas kernel 1: softmax cross-entropy on native (B, C, P) layout with
# in-kernel reduction (resident per-batch accumulator).
# --------------------------------------------------------------------------
def _ce_kernel(x_ref, t_ref, o_ref, *, n_pix, tp):
    j = pl.program_id(1)

    @pl.when(j == 0)
    def _():
        o_ref[...] = jnp.zeros_like(o_ref)

    x = x_ref[0].astype(jnp.float32)                          # (C, TP) upcast in-kernel
    t = t_ref[0]                                              # (1, TP) int32
    m = jnp.max(x, axis=0, keepdims=True)                     # (1, TP)
    lse = m + jnp.log(jnp.sum(jnp.exp(x - m), axis=0, keepdims=True))
    cls_iota = jax.lax.broadcasted_iota(jnp.int32, x.shape, 0)
    tgt_logit = jnp.sum(jnp.where(cls_iota == t, x, 0.0), axis=0, keepdims=True)
    loss = lse - tgt_logit                                    # (1, TP)

    if n_pix % tp != 0:                                       # static: ragged last tile
        pix = j * tp + jax.lax.broadcasted_iota(jnp.int32, (1, tp), 1)
        loss = jnp.where(pix < n_pix, loss, 0.0)              # select: garbage-safe

    lane = jax.lax.broadcasted_iota(jnp.int32, (1, 1, 128), 2)
    o_ref[...] = o_ref[...] + jnp.where(lane == 0, jnp.sum(loss), 0.0)


def cross_entropy_pallas(logits, target):
    """logits: (B, C, *spatial), target: (B, *spatial) int."""
    B, C = logits.shape[0], logits.shape[1]
    P = int(np.prod(logits.shape[2:]))
    x = logits.reshape(B, C, P)                               # native dtype, free reshape
    t = target.reshape(B, 1, P).astype(jnp.int32)

    # Pixel tile from a ~2 MiB VMEM budget for the (1, C, TP) logits block.
    itemsize = jnp.dtype(x.dtype).itemsize
    budget = 2 * 1024 * 1024
    tp_budget = max(128, (budget // (itemsize * C)) // 128 * 128)
    if P <= tp_budget:
        TP, nT = P, 1                                         # full dim (any P allowed)
    else:
        TP, nT = tp_budget, pl.cdiv(P, tp_budget)             # mult of 128, maybe ragged

    kernel = functools.partial(_ce_kernel, n_pix=P, tp=TP)
    partial = pl.pallas_call(
        kernel,
        out_shape=jax.ShapeDtypeStruct((B, 1, 128), jnp.float32),
        grid_spec=pltpu.PrefetchScalarGridSpec(
            num_scalar_prefetch=0,
            grid=(B, nT),
            in_specs=[
                pl.BlockSpec((1, C, TP), lambda b, j: (b, 0, j)),
                pl.BlockSpec((1, 1, TP), lambda b, j: (b, 0, j)),
            ],
            out_specs=pl.BlockSpec((1, 1, 128), lambda b, j: (b, 0, 0)),
        ),
        compiler_params=pltpu.CompilerParams(
            dimension_semantics=("parallel", "arbitrary")),
    )(x, t)
    # TODO(synk): ignore_index is not applied in the main CE loss (plain
    # nn.CrossEntropyLoss semantics: mean over all pixels).
    return jnp.sum(partial) / (B * P)


# --------------------------------------------------------------------------
# Pallas kernel 2: PixelContrastLoss._contrastive, two-pass flash-style over C.
# --------------------------------------------------------------------------
def _contrastive_kernel(tbl_ref, a_ref, c_ref, ya_ref, yc_ref,
                        plog_ref, pcnt_ref, m_scr, s_scr,
                        *, inv_temp, n_contrast, ta, tc, ragged_c):
    i = pl.program_id(0)          # anchor-row tile (parallel, outermost)
    p = pl.program_id(1)          # pass: 0 = stats, 1 = log accumulation
    j = pl.program_id(2)          # contrast-column tile (reduction)

    @pl.when((p == 0) & (j == 0))
    def _():
        m_scr[...] = jnp.full_like(m_scr, -1e30)
        s_scr[...] = jnp.zeros_like(s_scr)
        plog_ref[...] = jnp.zeros_like(plog_ref)
        pcnt_ref[...] = jnp.zeros_like(pcnt_ref)

    col_iota = jax.lax.broadcasted_iota(jnp.int32, (1, tc), 1)

    def tile_logits_and_pos():
        # inv_temp applied to the small (TA, D) anchor tile, not the (TA, TC) product.
        a = (a_ref[...].astype(jnp.float32) * inv_temp).astype(jnp.bfloat16)
        c = c_ref[...].astype(jnp.bfloat16)
        adc = jax.lax.dot_general(                            # (TA, D) @ (TC, D)^T on MXU
            a, c, dimension_numbers=(((1,), (1,)), ((), ())),
            preferred_element_type=jnp.float32)
        label_eq = ya_ref[...] == yc_ref[...]                 # (TA,1)==(1,TC) -> (TA,TC)
        row_g = i * ta + jax.lax.broadcasted_iota(jnp.int32, (ta, 1), 0)
        col_g = j * tc + col_iota
        pos = jnp.logical_and(label_eq, row_g != col_g)       # mask * logits_mask
        return adc, label_eq, pos

    @pl.when(p == 0)
    def _stats():
        adc, label_eq, pos = tile_logits_and_pos()
        neg = jnp.logical_not(label_eq)                       # 1 - mask (pre-diagonal)
        if ragged_c:                                          # static: only if C % TC != 0
            col_valid = (j * tc + col_iota) < n_contrast
            adc_for_max = jnp.where(col_valid, adc, -1e30)
            neg = jnp.logical_and(neg, col_valid)
        else:
            adc_for_max = adc
        m_old = m_scr[...]
        m_new = jnp.maximum(m_old, jnp.max(adc_for_max, axis=1, keepdims=True))
        e = jnp.exp(adc - m_new)
        s_scr[...] = s_scr[...] * jnp.exp(m_old - m_new) + \
            jnp.sum(jnp.where(neg, e, 0.0), axis=1, keepdims=True)
        pcnt_ref[...] = pcnt_ref[...] + jnp.sum(pos.astype(jnp.float32), axis=1,
                                                keepdims=True)
        m_scr[...] = m_new

    # Pass 1 is skipped entirely (matmul included) for tiles with no possible
    # positives, via the scalar-prefetched has-positive table.
    @pl.when((p == 1) & (tbl_ref[i, j] > 0))
    def _log_prob():
        adc, _, pos = tile_logits_and_pos()
        logit = adc - m_scr[...]
        log_prob = logit - jnp.log(jnp.exp(logit) + s_scr[...])
        plog_ref[...] = plog_ref[...] + jnp.sum(jnp.where(pos, log_prob, 0.0),
                                                axis=1, keepdims=True)


def contrastive_pallas(X_anchor, y_anchor, queue, temperature, base_temperature):
    """X_anchor: (anchor_num, n_view, D), y_anchor: (anchor_num,), queue: (cls, cache, D)."""
    anchor_num, n_view, D = X_anchor.shape
    # anchor_feature = cat(unbind(X_anchor, dim=1), dim=0)  (view-major ordering)
    anchor_feature = jnp.concatenate([X_anchor[:, v, :] for v in range(n_view)], axis=0)
    y_a = jnp.tile(jnp.asarray(y_anchor).astype(jnp.int32).reshape(-1), (n_view,))

    # _sample_negative: pure reshape + arange glue; the big queue is NOT copied,
    # padded, transposed or cast on the host side.
    class_num, cache_size, Dq = queue.shape
    X_contrast = jnp.reshape(queue, (class_num * cache_size, Dq))   # free reshape, f32

    A = anchor_num * n_view
    C = class_num * cache_size

    # Anchor tiling: nA == 1 when A is small (queue streams exactly twice);
    # nA == 2 for large A so both v7x TensorCores get an anchor tile.
    if A <= 256:
        TA, nA = _round_up(A, 8), 1
    else:
        TA, nA = _round_up(pl.cdiv(A, 2), 8), 2
    A_pad = nA * TA

    # Contrast tiling: whole array as one block when small, else 1024-column tiles.
    if C <= 1024:
        TC, nC = C, 1
    else:
        TC, nC = 1024, pl.cdiv(C, 1024)
    C_pad = nC * TC
    ragged_c = (C % TC) != 0

    # Small padded copies only (anchors + labels); padded rows/cols use sentinels.
    a_feat = jnp.zeros((A_pad, D), X_anchor.dtype).at[:A].set(anchor_feature)
    ya = jnp.full((A_pad, 1), -1, jnp.int32).at[:A, 0].set(y_a)
    yc_core = jnp.repeat(jnp.arange(class_num, dtype=jnp.int32), cache_size)
    yc = jnp.full((1, C_pad), -2_000_000_000, jnp.int32).at[0, :C].set(yc_core)

    # has-positive table (nA, nC): the queue is class-contiguous, so a contrast tile
    # can only hold positives for an anchor tile if one of its labels falls in the
    # tile's class range.  Conservative superset -> skipping is exact.
    labs = ya[:, 0].reshape(nA, TA)
    jj = jnp.arange(nC)
    col_lo = (jj * TC) // cache_size
    col_hi = (jnp.minimum(jj * TC + TC, C) - 1) // cache_size
    has_pos = jnp.any((labs[:, :, None] >= col_lo[None, None, :]) &
                      (labs[:, :, None] <= col_hi[None, None, :]),
                      axis=1).astype(jnp.int32)

    kernel = functools.partial(
        _contrastive_kernel,
        inv_temp=float(1.0 / temperature),
        n_contrast=C, ta=TA, tc=TC, ragged_c=bool(ragged_c))

    plog, pcnt = pl.pallas_call(
        kernel,
        out_shape=(jax.ShapeDtypeStruct((A_pad, 1), jnp.float32),
                   jax.ShapeDtypeStruct((A_pad, 1), jnp.float32)),
        grid_spec=pltpu.PrefetchScalarGridSpec(
            num_scalar_prefetch=1,
            grid=(nA, 2, nC),
            in_specs=[
                pl.BlockSpec((TA, D), lambda i, p, j, tbl: (i, 0)),
                pl.BlockSpec((TC, D), lambda i, p, j, tbl: (j, 0)),
                pl.BlockSpec((TA, 1), lambda i, p, j, tbl: (i, 0)),
                pl.BlockSpec((1, TC), lambda i, p, j, tbl: (0, j)),
            ],
            out_specs=[
                pl.BlockSpec((TA, 1), lambda i, p, j, tbl: (i, 0)),
                pl.BlockSpec((TA, 1), lambda i, p, j, tbl: (i, 0)),
            ],
            scratch_shapes=[pltpu.VMEM((TA, 1), jnp.float32)] * 2,
        ),
        compiler_params=pltpu.CompilerParams(
            dimension_semantics=("parallel", "arbitrary", "arbitrary"),
            vmem_limit_bytes=32 * 1024 * 1024),
    )(has_pos, a_feat, X_contrast, ya, yc)

    # TODO(synk): rows with zero positives are clamped (1e-12) instead of producing
    # NaN like the PyTorch reference would.
    mean_log_prob_pos = plog[:A, 0] / jnp.maximum(pcnt[:A, 0], 1e-12)
    loss_rows = -(temperature / base_temperature) * mean_log_prob_pos
    return jnp.mean(loss_rows)


# --------------------------------------------------------------------------
# Host-side glue: hard-anchor *index* selection (data-dependent shapes:
# unique / nonzero / randperm -> no clean Pallas equivalent).  Only the small
# integer label/prediction maps are touched; embeddings stay on device.
# --------------------------------------------------------------------------
def hard_anchor_sampling_indices(y_hat, y, max_views, max_samples, ignore_index, rng):
    batch_size = y_hat.shape[0]
    classes = []
    total_classes = 0
    for ii in range(batch_size):
        this_y = y_hat[ii]
        this_classes = [c for c in np.unique(this_y) if c != ignore_index]
        this_classes = [c for c in this_classes if (this_y == c).sum() > max_views]
        classes.append(this_classes)
        total_classes += len(this_classes)
    if total_classes == 0:
        return None, None, None
    n_view = min(max_samples // total_classes, max_views)
    if n_view == 0:
        return None, None, None

    b_idx = np.zeros((total_classes, n_view), np.int32)
    p_idx = np.zeros((total_classes, n_view), np.int32)
    y_ = np.zeros((total_classes,), np.float32)
    ptr = 0
    for ii in range(batch_size):
        this_y_hat = y_hat[ii]
        this_y = y[ii]
        for cls_id in classes[ii]:
            hard = np.nonzero((this_y_hat == cls_id) & (this_y != cls_id))[0]
            easy = np.nonzero((this_y_hat == cls_id) & (this_y == cls_id))[0]
            num_hard, num_easy = hard.shape[0], easy.shape[0]
            if num_hard >= n_view / 2 and num_easy >= n_view / 2:
                num_hard_keep = n_view // 2
                num_easy_keep = n_view - num_hard_keep
            elif num_hard >= n_view / 2:
                num_easy_keep = num_easy
                num_hard_keep = n_view - num_easy_keep
            elif num_easy >= n_view / 2:
                num_hard_keep = num_hard
                num_easy_keep = n_view - num_hard_keep
            else:
                raise Exception("this should never be touched")
            # TODO(synk): reference uses torch.randperm (global RNG); a seeded
            # numpy RNG is used here for deterministic selection.
            hard = hard[rng.permutation(num_hard)[:num_hard_keep]]
            easy = easy[rng.permutation(num_easy)[:num_easy_keep]]
            idx = np.concatenate([hard, easy], axis=0)
            b_idx[ptr, :] = ii
            p_idx[ptr, :] = idx
            y_[ptr] = float(cls_id)
            ptr += 1
    return b_idx, p_idx, y_


def _resize_nearest(x, size):
    """PyTorch F.interpolate(mode='nearest') for channel-first x: (B, C, *spatial)."""
    for d in range(len(size)):
        axis = 2 + d
        in_sz, out_sz = x.shape[axis], size[d]
        if in_sz != out_sz:
            idx = (jnp.arange(out_sz) * in_sz) // out_sz
            x = jnp.take(x, idx, axis=axis)
    return x


# --------------------------------------------------------------------------
# Module-level wrappers mirroring the PyTorch classes.
# --------------------------------------------------------------------------
class PixelContrastLossJAX:
    def __init__(self, temperature=0.07, base_temperature=0.07, ignore_index=-1,
                 max_samples=1024, max_views=1, ndim=2):
        self.temperature = temperature
        self.base_temperature = base_temperature
        self.ignore_index = ignore_index
        self.max_samples = max_samples
        self.max_views = max_views
        self.ndim = ndim
        self._rng = np.random.default_rng(0)

    def __call__(self, feats, labels, predict, queue=None):
        labels = labels.astype(jnp.float32)
        labels = _resize_nearest(labels, feats.shape[-self.ndim:])
        if labels.shape[1] != 1:
            if labels.ndim == 4:
                offsets = jnp.array([1, 2], jnp.float32).reshape(1, 2, 1, 1)
            else:
                offsets = jnp.array([1, 2], jnp.float32).reshape(1, 2, 1, 1, 1)
            labels = jnp.max(labels * offsets, axis=1)
        else:
            labels = jnp.squeeze(labels, axis=1)
        labels = labels.astype(jnp.int32)

        batch_size = feats.shape[0]
        feat_dim = feats.shape[1]
        labels = labels.reshape(batch_size, -1)
        predict = predict.reshape(batch_size, -1)
        # Keep embeddings in native (B, D, N) layout; only selected rows are gathered.
        feats_flat = feats.reshape(batch_size, feat_dim, -1)

        # Host-side index selection over the small label/prediction maps only.
        # The transfer + Python loop overlaps with the CE Pallas kernel that was
        # dispatched asynchronously before this call.
        yhat_np = np.asarray(jax.device_get(labels))
        y_np = np.asarray(jax.device_get(predict))
        b_idx, p_idx, y_ = hard_anchor_sampling_indices(
            yhat_np, y_np, self.max_views, self.max_samples, self.ignore_index,
            self._rng)
        if b_idx is None:
            return jnp.asarray(0.0, dtype=jnp.float32)

        # On-device gather of the selected anchors: (total_classes, n_view, D).
        X_anchor = feats_flat[jnp.asarray(b_idx), :, jnp.asarray(p_idx)]

        if queue is None:
            # TODO(synk): queue-less branch (contrast against the anchors themselves)
            # is not implemented; ContrastCELoss always supplies a queue here.
            return jnp.asarray(0.0, dtype=jnp.float32)
        return contrastive_pallas(X_anchor, y_, queue,
                                  self.temperature, self.base_temperature)


class ContrastCELossJAX:
    def __init__(self, ndim=2, weight=1.0, ignore_index=-1):
        self.ndim = ndim
        self.loss_weight = weight
        self.contrast_criterion = PixelContrastLossJAX(ignore_index=ignore_index, ndim=ndim)

    def main_loss(self, pred, target):
        # standard softmax cross-entropy; target (B, 1, *spatial) holds integer class ids
        tgt = jnp.squeeze(target, axis=1).astype(jnp.int32)
        return cross_entropy_pallas(pred, tgt)

    def __call__(self, preds, target, with_embed=False):
        assert "pred" in preds and "embed" in preds
        seg = preds["pred"]
        embedding = preds["embed"]
        segment_queue = preds.get("segment_queue")
        pixel_queue = preds.get("pixel_queue")

        if seg.shape[-self.ndim:] != target.shape[-self.ndim:]:
            # TODO(synk): bilinear/trilinear align_corners resize not implemented;
            # this script keeps seg and target at the same spatial size.
            raise NotImplementedError
        pred = seg

        # Dispatch the CE kernel first (async) so it overlaps with the host-side
        # hard-anchor sampling inside the contrastive criterion.
        loss = self.main_loss(pred, target)

        loss_contrast = jnp.asarray(0.0, dtype=jnp.float32)
        if segment_queue is not None and pixel_queue is not None:
            queue = jnp.concatenate((segment_queue, pixel_queue), axis=1)
            if seg.shape[1] <= 2:
                predict = jnp.argmax(seg, axis=1)
                if predict.ndim == 3:
                    offsets = jnp.array([1, 2]).reshape(1, 2, 1, 1)
                else:
                    offsets = jnp.array([1, 2]).reshape(1, 2, 1, 1, 1)
                predict = jnp.max(predict * offsets, axis=1)
            else:
                predict = jnp.argmax(seg, axis=1)
            loss_contrast = loss_contrast + self.contrast_criterion(
                embedding, target, predict, queue=queue)

        if with_embed:
            return loss + self.loss_weight * loss_contrast
        return loss + 0 * loss_contrast


# --------------------------------------------------------------------------
if __name__ == "__main__":
    key = jax.random.PRNGKey(0)
    k1, k2, k3, k4, k5 = jax.random.split(key, 5)

    B, NUM_CLASSES, D_EMB, H, W = 2, 4, 32, 16, 16
    CACHE = 8

    seg = jax.random.normal(k1, (B, NUM_CLASSES, H, W), jnp.float32)      # logits
    embed = jax.random.normal(k2, (B, D_EMB, H, W), jnp.float32)          # embeddings
    target = jax.random.randint(k3, (B, 1, H, W), 0, NUM_CLASSES).astype(jnp.float32)
    segment_queue = jax.random.normal(k4, (NUM_CLASSES, CACHE, D_EMB), jnp.float32)
    pixel_queue = jax.random.normal(k5, (NUM_CLASSES, CACHE, D_EMB), jnp.float32)

    preds = {
        "pred": seg,
        "embed": embed,
        "segment_queue": segment_queue,
        "pixel_queue": pixel_queue,
    }

    loss_mod = ContrastCELossJAX(ndim=2, weight=1.0, ignore_index=-1)
    out = loss_mod(preds, target, with_embed=False)
    out = jax.block_until_ready(out)
    assert jnp.isfinite(out)
    print("KERNEL_OK")
</pallas_src>

<mosaic_0001>
module attributes {stable_mosaic.version = 11 : i64} {
  func.func @_ce_kernel(%arg0: i32, %arg1: i32, %arg2: memref<1x4x256xf32, #tpu.memory_space<vmem>>, %arg3: memref<1x1x256xi32, #tpu.memory_space<vmem>>, %arg4: memref<1x1x128xf32, #tpu.memory_space<vmem>>) attributes {dimension_semantics = [#tpu.dimension_semantics<parallel>, #tpu.dimension_semantics<arbitrary>], iteration_bounds = array<i64: 2, 1>, scalar_prefetch = 0 : i64, scratch_operands = 0 : i64, tpu.core_type = #tpu.core_type<tc>, window_params = [{transform_indices = @transform_0, window_bounds = array<i64: 1, 4, 256>}, {transform_indices = @transform_1, window_bounds = array<i64: 1, 1, 256>}, {transform_indices = @transform_2, window_bounds = array<i64: 1, 1, 128>}]} {
    %c0_i32 = arith.constant 0 : i32
    %0 = arith.cmpi eq, %arg1, %c0_i32 : i32
    %1 = arith.extui %0 : i1 to i32
    %c0_i32_0 = arith.constant 0 : i32
    %2 = arith.cmpi ne, %1, %c0_i32_0 : i32
    scf.if %2 {
      %cst_18 = arith.constant 0.000000e+00 : f32
      %37 = vector.broadcast %cst_18 : f32 to vector<1x1x128xf32>
      %c0_19 = arith.constant 0 : index
      %c0_20 = arith.constant 0 : index
      %c0_21 = arith.constant 0 : index
      %38 = vector.load %arg4[%c0_19, %c0_20, %c0_21] : memref<1x1x128xf32, #tpu.memory_space<vmem>>, vector<1x1x128xf32>
      tpu.vector_store %arg4[%c0_19, %c0_20, %c0_21], %37 {strides = array<i32>} : memref<1x1x128xf32, #tpu.memory_space<vmem>>, vector<1x1x128xf32>,
    } else {
    }
    %c0 = arith.constant 0 : index
    %c0_1 = arith.constant 0 : index
    %c0_2 = arith.constant 0 : index
    %3 = vector.load %arg2[%c0, %c0_1, %c0_2] : memref<1x4x256xf32, #tpu.memory_space<vmem>>, vector<1x4x256xf32>
    %4 = vector.shape_cast %3 : vector<1x4x256xf32> to vector<4x256xf32>
    %c0_3 = arith.constant 0 : index
    %c0_4 = arith.constant 0 : index
    %c0_5 = arith.constant 0 : index
    %5 = vector.load %arg3[%c0_3, %c0_4, %c0_5] : memref<1x1x256xi32, #tpu.memory_space<vmem>>, vector<1x1x256xi32>
    %6 = vector.shape_cast %5 : vector<1x1x256xi32> to vector<1x256xi32>
    %cst = arith.constant dense<0xFF800000> : vector<256xf32>
    %7 = vector.multi_reduction <maximumf>, %4, %cst [0] : vector<4x256xf32> to vector<256xf32>
    %8 = vector.shape_cast %7 : vector<256xf32> to vector<1x256xf32>
    %9 = vector.broadcast %8 : vector<1x256xf32> to vector<4x256xf32>
    %10 = arith.subf %4, %9 : vector<4x256xf32>
    %11 = math.exp %10 : vector<4x256xf32>
    %cst_6 = arith.constant dense<0.000000e+00> : vector<256xf32>
    %12 = vector.multi_reduction <add>, %11, %cst_6 [0] : vector<4x256xf32> to vector<256xf32>
    %13 = vector.shape_cast %12 : vector<256xf32> to vector<1x256xf32>
    %14 = math.log %13 : vector<1x256xf32>
    %15 = arith.addf %8, %14 : vector<1x256xf32>
    %16 = tpu.iota {dimensions = array<i32: 0>} : vector<4x256xi32>
    %17 = vector.broadcast %6 : vector<1x256xi32> to vector<4x256xi32>
    %18 = arith.cmpi eq, %16, %17 : vector<4x256xi32>
    %cst_7 = arith.constant 0.000000e+00 : f32
    %19 = vector.broadcast %cst_7 : f32 to vector<4x256xf32>
    %20 = arith.select %18, %4, %19 : vector<4x256xi1>, vector<4x256xf32>
    %cst_8 = arith.constant dense<0.000000e+00> : vector<256xf32>
    %21 = vector.multi_reduction <add>, %20, %cst_8 [0] : vector<4x256xf32> to vector<256xf32>
    %22 = vector.shape_cast %21 : vector<256xf32> to vector<1x256xf32>
    %23 = arith.subf %15, %22 : vector<1x256xf32>
    %24 = tpu.iota {dimensions = array<i32: 2>} : vector<1x1x128xi32>
    %c0_9 = arith.constant 0 : index
    %c0_10 = arith.constant 0 : index
    %c0_11 = arith.constant 0 : index
    %25 = vector.load %arg4[%c0_9, %c0_10, %c0_11] : memref<1x1x128xf32, #tpu.memory_space<vmem>>, vector<1x1x128xf32>
    %c0_i32_12 = arith.constant 0 : i32
    %26 = vector.broadcast %c0_i32_12 : i32 to vector<1x1x128xi32>
    %27 = arith.cmpi eq, %24, %26 : vector<1x1x128xi32>
    %28 = vector.shape_cast %23 : vector<1x256xf32> to vector<1x1x256xf32>
    %cst_13 = arith.constant dense<0.000000e+00> : vector<1xf32>
    %29 = vector.multi_reduction <add>, %28, %cst_13 [1, 2] : vector<1x1x256xf32> to vector<1xf32>
    %30 = vector.shape_cast %29 : vector<1xf32> to vector<1x1x1xf32>
    %31 = vector.extract %30[0, 0, 0] : f32 from vector<1x1x1xf32>
    %cst_14 = arith.constant 0.000000e+00 : f32
    %32 = vector.broadcast %31 : f32 to vector<1x1x128xf32>
    %33 = vector.broadcast %cst_14 : f32 to vector<1x1x128xf32>
    %34 = arith.select %27, %32, %33 : vector<1x1x128xi1>, vector<1x1x128xf32>
    %35 = arith.addf %25, %34 : vector<1x1x128xf32>
    %c0_15 = arith.constant 0 : index
    %c0_16 = arith.constant 0 : index
    %c0_17 = arith.constant 0 : index
    %36 = vector.load %arg4[%c0_15, %c0_16, %c0_17] : memref<1x1x128xf32, #tpu.memory_space<vmem>>, vector<1x1x128xf32>
    tpu.vector_store %arg4[%c0_15, %c0_16, %c0_17], %35 {strides = array<i32>} : memref<1x1x128xf32, #tpu.memory_space<vmem>>, vector<1x1x128xf32>,
    return
  }
  func.func @transform_0(%arg0: i32, %arg1: i32) -> (i32, i32, i32) {
    %c0_i32 = arith.constant 0 : i32
    %c0_i32_0 = arith.constant 0 : i32
    return %arg0, %c0_i32, %arg1 : i32, i32, i32
  }
  func.func @transform_1(%arg0: i32, %arg1: i32) -> (i32, i32, i32) {
    %c0_i32 = arith.constant 0 : i32
    %c0_i32_0 = arith.constant 0 : i32
    return %arg0, %c0_i32, %arg1 : i32, i32, i32
  }
  func.func @transform_2(%arg0: i32, %arg1: i32) -> (i32, i32, i32) {
    %c0_i32 = arith.constant 0 : i32
    %c0_i32_0 = arith.constant 0 : i32
    %c0_i32_1 = arith.constant 0 : i32
    return %arg0, %c0_i32, %c0_i32_0 : i32, i32, i32
  }
}

</mosaic_0001>

<bundles_post_ra>
// kernel: tpu_custom_call.1
= control target key start
LH: loop header
LB: loop body
LE: loop exit
PB: predicated region body
PF: predicated region fallthrough
CT: control target
= control target key end

     0   :  { %7 = vsyncpa [#allocation3], 0  ;;  %s870_s0 = inlined_call_operand.hbm [shape: f32[2,4,256], index: 0, kind: input, shape index: {}]   ;;  %s871_s1 = inlined_call_operand.hbm [shape: s32[2,1,256], index: 1, kind: input, shape index: {}]   ;;  %s872_s2 = inlined_call_operand.hbm [shape: f32[2,1,128], index: 2, kind: output, shape index: {}]  }
   0x1   :  { %9 = vsyncpa [#allocation3 + $0x1], 0 }
   0x2   :  { %10 = vsyncpa [#allocation6], 0 }
   0x3   :  { %12 = vsyncpa [#allocation6 + $0x1], 0 }
   0x4   :  { %13 = vsyncpa [#allocation4], 0 }
   0x5   :  { %15 = vsyncpa [#allocation4 + $0x1], 0  ;;  %s697_s9 = smov 0   ;;  %s699_s10 = smov 0  }
   0x6   :  { %s701_s11 = smov 0   ;;  %s703_s12 = smov 0  }
   0x7   :  { %s705_s13 = smov 0   ;;  %s707_s14 = smov 0  }
   0x8 LB: > { %s441_s15 = sadd.s32 4294967295, %s676_s14   ;;  %s442_s16 = sadd.s32 4294967294, %s676_s14   ;;  %s676_s14 = sphi %s707_s14, %s21_s14   ;;  %s672_s13 = sphi %s705_s13, %s884_s13   ;;  %s668_s12 = sphi %s703_s12, %s883_s12   ;;  %s664_s11 = sphi %s701_s11, %s882_s11   ;;  %s660_s10 = sphi %s699_s10, %s881_s10   ;;  %s656_s9 = sphi %s697_s9, %s880_s9  }
   0x9   : > { %s33_s17 = sadd.s32 1, %s672_s13  ;;  %s42_s18 = sadd.s32 1, %s664_s11 }
   0xa   : > { %p35_p0 = scmp.ge.s32.totalorder %s33_s17, 2  ;;  %p49_p1 = scmp.ne.s32.totalorder %s664_s11, %s660_s10 }
   0xb   : > { %p50_p2 = scmp.eq.s32.totalorder %s676_s14, 0  ;;  %p55_p3 = scmp.ne.s32.totalorder %s660_s10, %s656_s9 }
   0xc   : > { %s886_s17 = smov (%p35_p0, %s33_s17), 0  ;;  %p56_p5 = scmp.eq.s32.totalorder %s441_s15, 0 }
   0xd   : > { %p738_p4 = por %p50_p2, %p49_p1  ;;  %s37_s20 = ssub.s32 %s672_s13, %s886_s17 }
   0xe   : > { %p107_p6 = scmp.eq.s32.totalorder %s441_s15, 1  ;;  %p40_p7 = scmp.eq.s32.totalorder %s37_s20, 0 }
   0xf   : > { %p744_p8 = por %p56_p5, %p55_p3  ;;  %p113_p10 = scmp.eq.s32.totalorder %s442_s16, 1 }
  0x10   : > { %p748_p9 = por %p107_p6, %p49_p1  ;;  %p478_p13 = scmp.lt.s32.totalorder %s676_s14, 2 }
  0x11   : > { %s753_s23 = scalar_select %p40_p7, %s664_s11, %s42_s18  }
  0x12   : > { %p755_p11 = por %p113_p10, %p55_p3  ;;  %s762_s25 = sand.u32 1, %s664_s11  }
  0x13   : > { %s445_s26 = sshll.u32 %s762_s25, 3  ;;  %s457_s27 = sshll.u32 %s672_s13, 7 }
  0x14   : > { %s145_s30 = scalar_lea.hbm %s870_s0, %s457_s27  ;;  %s137_s3 = scalar_lea.vmem [#allocation2], %s445_s26 }
  0x15   : > { %s147_s4 = sshll.u32 %s137_s3, 4  ;;  %p771_p0 = pnand %p478_p13, %p738_p4  ;;  %s148_s4 = int_to_ptr.vmem [resolvable:$true] %s147_s4 }
  0x16   : > { %p451_p1 = scmp.ge.s32.totalorder %s676_s14, 1  ;;  %p173_p2 = scmp.lt.s32.totalorder %s676_s14, 3 }
  0x17   : > { %s134_s6 = scalar_lea.sflag [#allocation3], %s762_s25  ;;  %p538_p3 = pneg %p771_p0 }
  0x18   : > { %s549_s7 = scalar_lea.vmem %s148_s4, 128  ;;  %s678_s8 = smov [#allocation2]  }
  0x19   : > { %p550_p5 = scmp.ne.s32.totalorder %s148_s4, %s549_s7  ;;  %s554_s15 = sshll.u32 %s678_s8, 4  ;;  %s555_s15 = int_to_ptr.vmem [resolvable:$false] %s554_s15 }
  0x1a   : > { %s556_s16 = scalar_lea.vmem %s555_s15, 256  ;;  %p557_p4 = scmp.lt.s32.totalorder %s148_s4, %s555_s15 }
  0x1b   : > { %p552_p6 = pnand %p550_p5, %p538_p3  ;;  %p558_p10 = scmp.lt.s32.totalorder %s556_s16, %s549_s7 }
  0x1d   : > { %p553_p7 = pneg %p552_p6  ;;  %p559_p13 = por %p558_p10, %p557_p4 }
  0x1f   : > { %p560_p12 = pnand %p559_p13, %p553_p7 }
  0x21   : > { %563 = shalt.err (!%p560_p12)
}
  0x22   : > { %470 = dma.hbm_to_vmem [thread:$0]  (!%p771_p0), %s145_s30, 128, %s148_s4, %s134_s6  }
  0x23   : > { %p789_p5 = pnand %p451_p1, %p173_p2  ;;  %s448_s19 = sshll.u32 %s762_s25, 1 }
  0x24   : > { %s458_s20 = sshll.u32 %s672_s13, 5  ;;  %s158_s29 = scalar_lea.vmem [#allocation5], %s448_s19 }
  0x25   : > { %s166_s28 = scalar_lea.hbm %s871_s1, %s458_s20  ;;  %s168_s3 = sshll.u32 %s158_s29, 4  ;;  %s169_s3 = int_to_ptr.vmem [resolvable:$true] %s168_s3 }
  0x26   : > { %s155_s7 = scalar_lea.sflag [#allocation6], %s762_s25  ;;  %s577_s8 = scalar_lea.vmem %s169_s3, 32 }
  0x27   : > { %p578_p12 = scmp.ne.s32.totalorder %s169_s3, %s577_s8  ;;  %s679_s30 = smov [#allocation5]  }
  0x28   : > { %s582_s4 = sshll.u32 %s679_s30, 4  ;;  %s583_s4 = int_to_ptr.vmem [resolvable:$false] %s582_s4 }
  0x29   : > { %p580_p6 = pnand %p578_p12, %p538_p3  ;;  %s584_s6 = scalar_lea.vmem %s583_s4, 64 }
  0x2a   : > { %p585_p1 = scmp.lt.s32.totalorder %s169_s3, %s583_s4  ;;  %p586_p2 = scmp.lt.s32.totalorder %s584_s6, %s577_s8 }
  0x2b   : > { %p581_p7 = pneg %p580_p6 }
  0x2c   : > { %p587_p4 = por %p586_p2, %p585_p1 }
  0x2e   : > { %p588_p10 = pnand %p587_p4, %p581_p7 }
  0x30   : > { %591 = shalt.err (!%p588_p10)
}
  0x31   : > { %473 = dma.hbm_to_vmem [thread:$0]  (!%p771_p0), %s166_s28, 32, %s169_s3, %s155_s7  }
  0x32   : > { %177 = sbr.rel (%p789_p5) target bundleno = 350 (0x15e), region = 28  ;;  %s807_s25 = sand.u32 (!%p789_p5), 1, %s660_s10  }
  0x33   : > { %s452_s15 = sshll.u32 (!%p789_p5), %s807_s25, 3  ;;  %s180_s16 = scalar_lea.sflag (!%p789_p5), [#allocation3], %s807_s25 }
  0x34   : > { %s183_s19 = scalar_lea.vmem (!%p789_p5), [#allocation2], %s452_s15 }
  0x37   : > { %643 = dma.done.wait (%p744_p8), %s180_s16, 128  }
  0x38   : > { %645 = vsyncadd (%p744_p8), %s180_s16, 4294967168  ;;  %s453_s5 = sshll.u32 %s807_s25, 1  ;;  %s189_s18 = scalar_lea.sflag [#allocation6], %s807_s25 }
  0x39   : > { %s192_s20 = scalar_lea.vmem [#allocation5], %s453_s5 }
  0x3a   : > { %647 = dma.done.wait (%p744_p8), %s189_s18, 32  }
  0x3b   : > { %649 = vsyncadd (%p744_p8), %s189_s18, 4294967264  ;;  %vm229_vm0 = vcmask 1043456   ;;  %v224_v0 = vld [vmem:[%s183_s19] sm:$0xff]  ;;  %v274_v18 = vlaneseq  ;;  %v225_v22 = vld [vmem:[%s192_s20] sm:$0x3]  ;;  %vm308_vm3 = vcmask 1040384  }
  0x3c   : > { %v227_v1 = vcombine.high %v224_v0, %v224_v0  ;;  %v230_v2 = vsel %vm229_vm0, %v224_v0, -inf  ;;  %s216_s21 = scalar_lea.vmem [#allocation7], %s807_s25  ;;  %s454_s26 = sshll.u32 %s668_s12, 4 }
  0x3d   : > { %v231_v3 = vrot.slane %v230_v2, 4  ;;  %v275_v20 = vshrl.u32 %v274_v18, 7  ;;  %s338_s28 = sshll.u32 %s216_s21, 4  ;;  %s336_s7 = scalar_lea.hbm %s872_s2, %s454_s26  ;;  %s339_s28 = int_to_ptr.vmem [resolvable:$true] %s338_s28 }
  0x3e   : > { %v237_v4 = vsel %vm229_vm0, %v227_v1, -inf  ;;  %s326_s8 = scalar_lea.sflag [#allocation4], %s807_s25  ;;  %s592_s30 = scalar_lea.vmem %s339_s28, 16 }
  0x3f   : > { %v232_v5 = vmax.f32 %v230_v2, %v231_v3  ;;  %v238_v6 = vrot.slane %v237_v4, 4  ;;  %v278_v21 = vsub.s32 0, %v275_v20  ;;  %v282_v23 = vsub.s32 1, %v275_v20  ;;  %p593_p8 = scmp.ne.s32.totalorder %s339_s28, %s592_s30  ;;  %s681_s4 = smov [#allocation7]  }
  0x40   : > { %s596_s12 = sshll.u32 %s681_s4, 4  ;;  %s597_s12 = int_to_ptr.vmem [resolvable:$false] %s596_s12 }
  0x41   : > { %v233_v7 = vrot.slane %v232_v5, 2  ;;  %v239_v8 = vmax.f32 %v237_v4, %v238_v6  ;;  %v279_v24 = vrot.slane %v225_v22, %v278_v21  ;;  %v283_v25 = vrot.slane %v225_v22, %v282_v23  ;;  %p594_p0 = pnand %p593_p8, %p748_p9  ;;  %s598_s6 = scalar_lea.vmem %s597_s12, 32 }
  0x42   : > { %p599_p13 = scmp.lt.s32.totalorder %s339_s28, %s597_s12  ;;  %p600_p5 = scmp.lt.s32.totalorder %s598_s6, %s592_s30 }
  0x43   : > { %v234_v9 = vmax.f32 %v232_v5, %v233_v7  ;;  %v240_v10 = vrot.slane %v239_v8, 2  ;;  %vm284_vm1 = vcmp.eq.s32.totalorder %v275_v20, %v279_v24  ;;  %vm285_vm2 = vcmp.eq.s32.totalorder %v275_v20, %v283_v25  ;;  %p595_p3 = pneg %p594_p0 }
  0x44   : > { %v286_v30 = vsel %vm284_vm1, %v224_v0, 0.0  ;;  %v287_v34 = vsel %vm285_vm2, %v227_v1, 0.0  ;;  %v680_v5 = vmov 0.0   ;;  %p601_p12 = por %p600_p5, %p599_p13 }
  0x45   : > { %v235_v11 = vrot.slane %v234_v9, 1  ;;  %v241_v12 = vmax.f32 %v239_v8, %v240_v10  ;;  %v288_v35 = vsel %vm229_vm0, %v286_v30, 0.0  ;;  %v295_v38 = vsel %vm229_vm0, %v287_v34, 0.0  ;;  %223 = vst [vmem:[%s216_s21] sm:$0x1] %v680_v5 }
  0x46   : > { %v289_v41 = vrot.slane %v288_v35, 4  ;;  %v296_v44 = vrot.slane %v295_v38, 4  ;;  %p602_p6 = pnand %p601_p12, %p595_p3 }
  0x47   : > { %v236_v13 = vmax.f32 %v234_v9, %v235_v11  ;;  %v242_v14 = vrot.slane %v241_v12, 1 }
  0x48   : > { %v290_v47 = vadd.f32 %v289_v41, %v288_v35  ;;  %v297_v49 = vadd.f32 %v296_v44, %v295_v38 }
  0x49   : > { %v243_v15 = vmax.f32 %v241_v12, %v242_v14 }
  0x4a   : > { %v291_v50 = vrot.slane %v290_v47, 2  ;;  %v298_v51 = vrot.slane %v297_v49, 2 }
  0x4b   : > { %v246_v16 = vcombine.low %v236_v13, %v243_v15 }
  0x4c   : > { %v292_v52 = vadd.f32 %v291_v50, %v290_v47  ;;  %v299_v53 = vadd.f32 %v298_v51, %v297_v49  ;;  %v306_v14 = vld [vmem:[%s216_s21] sm:$0x1] }
  0x4d   : > { %v248_v17 = vsub.f32 %v224_v0, %v246_v16 }
  0x4e   : > { %v293_v54 = vrot.slane %v292_v52, 1  ;;  %v300_v55 = vrot.slane %v299_v53, 1 }
  0x4f   : > { %v249_v19 = vmul.f32 1.442695, %v248_v17 }
  0x50   : > { %v294_v58 = vadd.f32 %v293_v54, %v292_v52  ;;  %v301_v62 = vadd.f32 %v300_v55, %v299_v53 }
  0x51   : > { %530 = vpow2.f32 %v249_v19 }
  0x5e   : > { %v531_v26 = vpop.eup %530 }
  0x5f   : > { %v252_v27 = vcombine.high %v531_v26, %v531_v26  ;;  %v254_v28 = vsel %vm229_vm0, %v531_v26, 0.0 }
  0x60   : > { %v255_v29 = vrot.slane %v254_v28, 4 }
  0x61   : > { %v261_v31 = vsel %vm229_vm0, %v252_v27, 0.0 }
  0x62   : > { %v256_v32 = vadd.f32 %v255_v29, %v254_v28  ;;  %v262_v33 = vrot.slane %v261_v31, 4 }
  0x64   : > { %v257_v36 = vrot.slane %v256_v32, 2  ;;  %v263_v37 = vadd.f32 %v262_v33, %v261_v31 }
  0x66   : > { %v258_v39 = vadd.f32 %v257_v36, %v256_v32  ;;  %v264_v40 = vrot.slane %v263_v37, 2 }
  0x68   : > { %v259_v42 = vrot.slane %v258_v39, 1  ;;  %v265_v43 = vadd.f32 %v264_v40, %v263_v37 }
  0x6a   : > { %v260_v45 = vadd.f32 %v259_v42, %v258_v39  ;;  %v266_v46 = vrot.slane %v265_v43, 1 }
  0x6c   : > { %v267_v48 = vadd.f32 %v266_v46, %v265_v43  ;;  %532 = vlog2.f32 %v260_v45 }
  0x6e   : > { %534 = vlog2.f32 %v267_v48 }
  0x79   : > { %v533_v56 = vpop.eup %532 }
  0x7a   : > { %v269_v57 = vmul.f32 0.6931472, %v533_v56 }
  0x7b   : > { %v535_v59 = vpop.eup %534 }
  0x7c   : > { %v271_v60 = vmul.f32 0.6931472, %v535_v59  ;;  %v272_v61 = vadd.f32 %v269_v57, %v236_v13  ;;  %v305_v13 = vand.u32 127, %v274_v18 }
  0x7e   : > { %v273_v63 = vadd.f32 %v271_v60, %v243_v15  ;;  %v302_v0 = vsub.f32 %v272_v61, %v294_v58  ;;  %vm307_vm4 = vcmp.eq.s32.totalorder %v305_v13, 0 }
  0x80   : > { %v303_v1 = vsub.f32 %v273_v63, %v301_v62  ;;  %v309_v2 = vsel %vm308_vm3, %v302_v0, 0.0 }
  0x82   : > { %v310_v3 = vsel %vm308_vm3, %v303_v1, 0.0 }
  0x83   : > { %v311_v4 = vadd.f32 %v310_v3, %v309_v2 }
  0x85   : > { %312 = vadd.xlane.f32.xlu0 %v311_v4 }
 0x10e   : > { %v313_v6 = vpop.xlane.xlu0 %312 }
 0x10f   : > { %v314_v7 = vrot.slane %v313_v6, 4 }
 0x111   : > { %v315_v8 = vadd.f32 %v314_v7, %v313_v6 }
 0x113   : > { %v316_v9 = vrot.slane %v315_v8, 2 }
 0x115   : > { %v317_v10 = vadd.f32 %v316_v9, %v315_v8 }
 0x117   : > { %v318_v11 = vrot.slane %v317_v10, 1 }
 0x119   : > { %v319_v12 = vadd.f32 %v318_v11, %v317_v10 }
 0x11b   : > { %459 = vpush %v319_v12 }
 0x14c   : > { %s460_s27 = spop %459 }
 0x14d   : > { %v321_v15 = vstv %s460_s27 }
 0x14e   : > { %v322_v16 = vsel %vm307_vm4, %v321_v15, 0.0 }
 0x14f   : > { %v323_v17 = vadd.f32 %v322_v16, %v306_v14 }
 0x151   : > { %324 = vst [vmem:[%s216_s21] sm:$0x1] %v323_v17 }
 0x152   : > { %605 = shalt.err (!%p602_p6)
}
 0x153   : > { %s606_s15 = scalar_lea.hbm %s336_s7, 16  ;;  %s610_s19 = scalar_lea.hbm %s872_s2, 32 }
 0x154   : > { %p607_p7 = scmp.ne.s32.totalorder %s336_s7, %s606_s15  ;;  %p611_p4 = scmp.lt.s32.totalorder %s336_s7, %s872_s2 }
 0x155   : > { %p612_p10 = scmp.lt.s32.totalorder %s610_s19, %s606_s15 }
 0x156   : > { %p608_p1 = pnand %p607_p7, %p748_p9 }
 0x157   : > { %p613_p8 = por %p612_p10, %p611_p4 }
 0x158   : > { %p609_p2 = pneg %p608_p1 }
 0x15a   : > { %p614_p0 = pnand %p613_p8, %p609_p2 }
 0x15c   : > { %617 = shalt.err (!%p614_p0)
}
 0x15d   : > { %465 = dma.vmem_to_hbm [thread:$0]  (%p748_p9), %s339_s28, 16, %s336_s7, %s326_s8  }
 0x15e PF: > { %s350_s20 = sand.u32 1, %s656_s9   ;;  %p879_p3 = scmp.ge.s32.totalorder %s676_s14, 2 }
 0x15f   : > { %s351_s21 = scalar_lea.sflag [#allocation4], %s350_s20 }
 0x160   : > { %p475_p13 = pnand %p879_p3, %p755_p11 }
 0x162   : > { %p476_p5 = pneg %p475_p13 }
 0x164   : > { %651 = dma.done.wait (%p476_p5), %s351_s21, 16  }
 0x165   : > { %653 = vsyncadd (%p476_p5), %s351_s21, 4294967280  ;;  %s21_s14 = sadd.s32 1, %s676_s14   ;;  %s880_s9 = smov %s660_s10 }
 0x166   : > { %p18_p12 = scmp.ge.s32.totalorder %s21_s14, 4   ;;  %s881_s10 = smov %s664_s11 }
 0x167   : > { %s882_s11 = smov %s753_s23  ;;  %s883_s12 = smov %s672_s13 }
 0x168   : > { %s884_s13 = smov %s886_s17  ;;  %20 = sbr.rel (!%p18_p12) target bundleno = 8 (0x8), region = 90 }
 0x16d   :  { %355 = vsyncpa [#allocation3], 1 }
 0x16e   :  { %357 = vsyncpa [#allocation3 + $0x1], 1 }
 0x16f   :  { %358 = vsyncpa [#allocation6], 1 }
 0x170   :  { %360 = vsyncpa [#allocation6 + $0x1], 1 }
 0x171   :  { %361 = vsyncpa [#allocation4], 1 }
 0x172   :  { %363 = vsyncpa [#allocation4 + $0x1], 1 }

</bundles_post_ra>
